<compile_context>
chip_gen: v7x
topology: tpu7x:2x2x1
jax: 0.10.0
libtpu: 0.0.40
codegen_flags: <defaults>
</compile_context>

<pallas_src>
import functools

import jax
import jax.numpy as jnp
from jax.experimental import pallas as pl
from jax.experimental.pallas import tpu as pltpu

_LANE = 128
_SINGLE_TILE_MAX = 256      # above this, force >= 2 grid steps (v7x megacore)


def _round_up(n, m):
    return ((n + m - 1) // m) * m


def _cdiv(a, b):
    return -(-a // b)


def _mlp_kernel(x_ref, t_ref, w1x_ref, w1t_ref, b1_ref, w2_ref, b2_ref,
                w3_ref, b3_ref, w4_ref, b4_ref, out_ref):
    wdt = w2_ref.dtype                                # f32 or bf16 (static)
    x = x_ref[...]                                    # (TB, D)  f32
    t = t_ref[...]                                    # (TB, 1)  f32

    # Layer 1: x @ w1x (MXU) + rank-1 t update (VPU, replaces the concat) + bias
    h = jnp.dot(x.astype(wdt), w1x_ref[...], preferred_element_type=jnp.float32)
    h = h + t * w1t_ref[...] + b1_ref[...]            # (TB,1)*(1,Hp) broadcast
    h = jnp.maximum(h, 0.0)

    # Layer 2
    h = jnp.dot(h.astype(wdt), w2_ref[...], preferred_element_type=jnp.float32)
    h = jnp.maximum(h + b2_ref[...], 0.0)

    # Layer 3
    h = jnp.dot(h.astype(wdt), w3_ref[...], preferred_element_type=jnp.float32)
    h = jnp.maximum(h + b3_ref[...], 0.0)

    # Layer 4: output kept at the true feature width D (no lane padding stored)
    out = jnp.dot(h.astype(wdt), w4_ref[...], preferred_element_type=jnp.float32)
    out_ref[...] = (out + b4_ref[...]).astype(out_ref.dtype)


def _choose_tile(B, tile_b):
    """Pick (batch_tile, n_grid_steps). Small B -> one tile; otherwise >= 2
    (even-preferred) steps so dimension_semantics=('parallel',) can shard the
    grid across v7x's two TensorCores."""
    if B <= _SINGLE_TILE_MAX:
        return B, 1
    n_steps = max(2, _cdiv(B, tile_b))
    if n_steps % 2:
        n_steps += 1
    tb = _round_up(_cdiv(B, n_steps), 8)
    return tb, _cdiv(B, tb)


def _vmem_limit_bytes(tb, D, Hp, w_itemsize):
    act = 2 * 4 * tb * (D + 1)                 # x, t tiles (double-buffered, f32)
    out = 2 * 4 * tb * D                       # out tile (double-buffered, f32)
    wts = w_itemsize * Hp * (2 * D + 2 * Hp)   # w1x, w2, w3, w4 (single-buffered)
    small = 4 * (4 * Hp + D)                   # w1t, b1..b3 (Hp) + b4 (D), f32
    scratch = 4 * tb * Hp * 4                  # headroom for compiler temporaries
    need = act + out + wts + small + scratch
    return int(min(max(2 * need, 32 * 1024 * 1024), 128 * 1024 * 1024))


@functools.partial(jax.jit, static_argnames=("tile_b",))
def fc_network_forward(x, t, kparams, tile_b=1024):
    """x: (B, input_dim) f32, t: (B, 1) f32 -> (B, input_dim) f32.

    kparams is the output of prepare_params (split / hidden-padded weights)."""
    w1x, w1t, b1, w2, b2, w3, b3, w4, b4 = kparams
    B, D = x.shape
    Hp = w1x.shape[1]          # padded hidden width (multiple of 128 or 256)

    tb, n_steps = _choose_tile(B, tile_b)

    def const_spec(shape):
        # Weights/biases: resident across every grid step, single-buffered.
        return pl.BlockSpec(shape, lambda i: (0, 0),
                            pipeline_mode=pl.Buffered(1))

    return pl.pallas_call(
        _mlp_kernel,
        out_shape=jax.ShapeDtypeStruct((B, D), x.dtype),
        grid_spec=pltpu.PrefetchScalarGridSpec(
            num_scalar_prefetch=0,
            grid=(n_steps,),
            in_specs=[
                # activations: tiled over batch (last block masked if ragged)
                pl.BlockSpec((tb, D), lambda i: (i, 0)),      # x
                pl.BlockSpec((tb, 1), lambda i: (i, 0)),      # t
                # weights / biases: full blocks, constant per step
                const_spec((D, Hp)),                          # w1x
                const_spec((1, Hp)),                          # w1t
                const_spec((1, Hp)),                          # b1
                const_spec((Hp, Hp)),                         # w2
                const_spec((1, Hp)),                          # b2
                const_spec((Hp, Hp)),                         # w3
                const_spec((1, Hp)),                          # b3
                const_spec((Hp, D)),                          # w4 (true D cols)
                const_spec((1, D)),                           # b4
            ],
            out_specs=pl.BlockSpec((tb, D), lambda i: (i, 0)),
        ),
        compiler_params=pltpu.CompilerParams(
            dimension_semantics=("parallel",),
            vmem_limit_bytes=_vmem_limit_bytes(tb, D, Hp, w2.dtype.itemsize),
        ),
    )(x, t, w1x, w1t, b1, w2, b2, w3, b3, w4, b4)


def init_params(key, input_dim, num_hidden):
    """nn.Linear-style init, weights stored (in_features, out_features)."""
    dims = [(input_dim + 1, num_hidden),
            (num_hidden, num_hidden),
            (num_hidden, num_hidden),
            (num_hidden, input_dim)]
    params = []
    for fan_in, fan_out in dims:
        key, kw, kb = jax.random.split(key, 3)
        bound = 1.0 / (fan_in ** 0.5)
        w = jax.random.uniform(kw, (fan_in, fan_out), jnp.float32, -bound, bound)
        b = jax.random.uniform(kb, (1, fan_out), jnp.float32, -bound, bound)
        params += [w, b]
    return tuple(params)


def prepare_params(params, input_dim, num_hidden, weight_dtype=None):
    """One-time prep: split w1 into x/t parts, zero-pad ONLY the hidden dim up
    to the MXU-friendly width (padded columns provably stay zero through every
    layer), and keep the output dim at its true width D so the kernel's HBM
    writeback is not inflated.  Biases and the rank-1 t row stay f32.
    weight_dtype=None -> auto: bf16 for large num_hidden (compute-bound on
    v6e/v7x), f32 otherwise (memory-bound; bf16 is neutral there)."""
    w1, b1, w2, b2, w3, b3, w4, b4 = params
    if weight_dtype is None:
        weight_dtype = jnp.bfloat16 if num_hidden >= 1024 else jnp.float32
    weight_dtype = jnp.dtype(weight_dtype)
    lane = 256 if weight_dtype == jnp.dtype(jnp.bfloat16) else _LANE
    Hp = _round_up(num_hidden, lane)

    def pad(a, rows, cols):
        return jnp.pad(a, ((0, rows - a.shape[0]), (0, cols - a.shape[1])))

    w1x = pad(w1[:input_dim], input_dim, Hp).astype(weight_dtype)    # (D, Hp)
    w1t = pad(w1[input_dim:input_dim + 1], 1, Hp)                    # (1, Hp) f32
    b1p = pad(b1, 1, Hp)
    w2p = pad(w2, Hp, Hp).astype(weight_dtype)
    b2p = pad(b2, 1, Hp)
    w3p = pad(w3, Hp, Hp).astype(weight_dtype)
    b3p = pad(b3, 1, Hp)
    w4p = pad(w4, Hp, input_dim).astype(weight_dtype)                # (Hp, D)
    b4p = b4                                                         # (1, D) f32
    return (w1x, w1t, b1p, w2p, b2p, w3p, b3p, w4p, b4p)


def _reference_forward(x, t, params):
    w1, b1, w2, b2, w3, b3, w4, b4 = params
    h = jnp.concatenate([x, t], axis=1)
    h = jnp.maximum(h @ w1 + b1, 0.0)
    h = jnp.maximum(h @ w2 + b2, 0.0)
    h = jnp.maximum(h @ w3 + b3, 0.0)
    return h @ w4 + b4


if __name__ == "__main__":
    input_dim = 16
    num_hidden = 32

    key = jax.random.PRNGKey(0)
    kp, kx, kt = jax.random.split(key, 3)

    params = init_params(kp, input_dim, num_hidden)
    kparams = prepare_params(params, input_dim, num_hidden)

    # small batch -> single-tile fast path
    batch = 8
    x = jax.random.normal(kx, (batch, input_dim), jnp.float32)
    t = jax.random.uniform(kt, (batch, 1), jnp.float32)
    out = jax.block_until_ready(fc_network_forward(x, t, kparams))
    ref = _reference_forward(x, t, params)
    assert out.shape == (batch, input_dim)
    assert jnp.allclose(out, ref, atol=1e-5, rtol=1e-5), "small-batch mismatch"

    # medium ragged batch -> 2 "parallel" grid steps, masked tail block, no pad copy
    big_b = 600
    xb = jax.random.normal(kx, (big_b, input_dim), jnp.float32)
    tb = jax.random.uniform(kt, (big_b, 1), jnp.float32)
    out_b = jax.block_until_ready(fc_network_forward(xb, tb, kparams))
    ref_b = _reference_forward(xb, tb, params)
    assert out_b.shape == (big_b, input_dim)
    assert jnp.allclose(out_b, ref_b, atol=1e-5, rtol=1e-5), "big-batch mismatch"

    print("KERNEL_OK")
</pallas_src>

<mosaic_0001>
module attributes {stable_mosaic.version = 11 : i64} {
  func.func @_mlp_kernel(%arg0: i32, %arg1: memref<8x16xf32, #tpu.memory_space<vmem>>, %arg2: memref<8x1xf32, #tpu.memory_space<vmem>>, %arg3: memref<16x128xf32, #tpu.memory_space<vmem>>, %arg4: memref<1x128xf32, #tpu.memory_space<vmem>>, %arg5: memref<1x128xf32, #tpu.memory_space<vmem>>, %arg6: memref<128x128xf32, #tpu.memory_space<vmem>>, %arg7: memref<1x128xf32, #tpu.memory_space<vmem>>, %arg8: memref<128x128xf32, #tpu.memory_space<vmem>>, %arg9: memref<1x128xf32, #tpu.memory_space<vmem>>, %arg10: memref<128x16xf32, #tpu.memory_space<vmem>>, %arg11: memref<1x16xf32, #tpu.memory_space<vmem>>, %arg12: memref<8x16xf32, #tpu.memory_space<vmem>>) attributes {dimension_semantics = [#tpu.dimension_semantics<parallel>], iteration_bounds = array<i64: 1>, scalar_prefetch = 0 : i64, scratch_operands = 0 : i64, tpu.core_type = #tpu.core_type<tc>, window_params = [{transform_indices = @transform_0, window_bounds = array<i64: 8, 16>}, {transform_indices = @transform_1, window_bounds = array<i64: 8, 1>}, {pipeline_mode = #tpu.pipeline_mode<synchronous>, transform_indices = @transform_2, window_bounds = array<i64: 16, 128>}, {pipeline_mode = #tpu.pipeline_mode<synchronous>, transform_indices = @transform_3, window_bounds = array<i64: 1, 128>}, {pipeline_mode = #tpu.pipeline_mode<synchronous>, transform_indices = @transform_4, window_bounds = array<i64: 1, 128>}, {pipeline_mode = #tpu.pipeline_mode<synchronous>, transform_indices = @transform_5, window_bounds = array<i64: 128, 128>}, {pipeline_mode = #tpu.pipeline_mode<synchronous>, transform_indices = @transform_6, window_bounds = array<i64: 1, 128>}, {pipeline_mode = #tpu.pipeline_mode<synchronous>, transform_indices = @transform_7, window_bounds = array<i64: 128, 128>}, {pipeline_mode = #tpu.pipeline_mode<synchronous>, transform_indices = @transform_8, window_bounds = array<i64: 1, 128>}, {pipeline_mode = #tpu.pipeline_mode<synchronous>, transform_indices = @transform_9, window_bounds = array<i64: 128, 16>}, {pipeline_mode = #tpu.pipeline_mode<synchronous>, transform_indices = @transform_10, window_bounds = array<i64: 1, 16>}, {transform_indices = @transform_11, window_bounds = array<i64: 8, 16>}]} {
    %c0 = arith.constant 0 : index
    %c0_0 = arith.constant 0 : index
    %0 = vector.load %arg1[%c0, %c0_0] : memref<8x16xf32, #tpu.memory_space<vmem>>, vector<8x16xf32>
    %c0_1 = arith.constant 0 : index
    %c0_2 = arith.constant 0 : index
    %1 = vector.load %arg2[%c0_1, %c0_2] : memref<8x1xf32, #tpu.memory_space<vmem>>, vector<8x1xf32>
    %c0_3 = arith.constant 0 : index
    %c0_4 = arith.constant 0 : index
    %2 = vector.load %arg3[%c0_3, %c0_4] : memref<16x128xf32, #tpu.memory_space<vmem>>, vector<16x128xf32>
    %cst = arith.constant dense<0.000000e+00> : vector<8x128xf32>
    %3 = tpu.matmul %0, %2, %cst {dimension_numbers = #tpu.dot_dimension_numbers<[1], [0], [0], [1], [0, 0, 1, 1], [], []>} : vector<8x16xf32>, vector<16x128xf32>, vector<8x128xf32> -> vector<8x128xf32>
    %c0_5 = arith.constant 0 : index
    %c0_6 = arith.constant 0 : index
    %4 = vector.load %arg4[%c0_5, %c0_6] : memref<1x128xf32, #tpu.memory_space<vmem>>, vector<1x128xf32>
    %5 = vector.broadcast %1 : vector<8x1xf32> to vector<8x128xf32>
    %6 = vector.broadcast %4 : vector<1x128xf32> to vector<8x128xf32>
    %7 = arith.mulf %5, %6 : vector<8x128xf32>
    %8 = arith.addf %3, %7 : vector<8x128xf32>
    %c0_7 = arith.constant 0 : index
    %c0_8 = arith.constant 0 : index
    %9 = vector.load %arg5[%c0_7, %c0_8] : memref<1x128xf32, #tpu.memory_space<vmem>>, vector<1x128xf32>
    %10 = vector.broadcast %9 : vector<1x128xf32> to vector<8x128xf32>
    %11 = arith.addf %8, %10 : vector<8x128xf32>
    %cst_9 = arith.constant 0.000000e+00 : f32
    %12 = vector.broadcast %cst_9 : f32 to vector<8x128xf32>
    %13 = arith.maximumf %11, %12 : vector<8x128xf32>
    %c0_10 = arith.constant 0 : index
    %c0_11 = arith.constant 0 : index
    %14 = vector.load %arg6[%c0_10, %c0_11] : memref<128x128xf32, #tpu.memory_space<vmem>>, vector<128x128xf32>
    %cst_12 = arith.constant dense<0.000000e+00> : vector<8x128xf32>
    %15 = tpu.matmul %13, %14, %cst_12 {dimension_numbers = #tpu.dot_dimension_numbers<[1], [0], [0], [1], [0, 0, 1, 1], [], []>} : vector<8x128xf32>, vector<128x128xf32>, vector<8x128xf32> -> vector<8x128xf32>
    %c0_13 = arith.constant 0 : index
    %c0_14 = arith.constant 0 : index
    %16 = vector.load %arg7[%c0_13, %c0_14] : memref<1x128xf32, #tpu.memory_space<vmem>>, vector<1x128xf32>
    %17 = vector.broadcast %16 : vector<1x128xf32> to vector<8x128xf32>
    %18 = arith.addf %15, %17 : vector<8x128xf32>
    %cst_15 = arith.constant 0.000000e+00 : f32
    %19 = vector.broadcast %cst_15 : f32 to vector<8x128xf32>
    %20 = arith.maximumf %18, %19 : vector<8x128xf32>
    %c0_16 = arith.constant 0 : index
    %c0_17 = arith.constant 0 : index
    %21 = vector.load %arg8[%c0_16, %c0_17] : memref<128x128xf32, #tpu.memory_space<vmem>>, vector<128x128xf32>
    %cst_18 = arith.constant dense<0.000000e+00> : vector<8x128xf32>
    %22 = tpu.matmul %20, %21, %cst_18 {dimension_numbers = #tpu.dot_dimension_numbers<[1], [0], [0], [1], [0, 0, 1, 1], [], []>} : vector<8x128xf32>, vector<128x128xf32>, vector<8x128xf32> -> vector<8x128xf32>
    %c0_19 = arith.constant 0 : index
    %c0_20 = arith.constant 0 : index
    %23 = vector.load %arg9[%c0_19, %c0_20] : memref<1x128xf32, #tpu.memory_space<vmem>>, vector<1x128xf32>
    %24 = vector.broadcast %23 : vector<1x128xf32> to vector<8x128xf32>
    %25 = arith.addf %22, %24 : vector<8x128xf32>
    %cst_21 = arith.constant 0.000000e+00 : f32
    %26 = vector.broadcast %cst_21 : f32 to vector<8x128xf32>
    %27 = arith.maximumf %25, %26 : vector<8x128xf32>
    %c0_22 = arith.constant 0 : index
    %c0_23 = arith.constant 0 : index
    %28 = vector.load %arg10[%c0_22, %c0_23] : memref<128x16xf32, #tpu.memory_space<vmem>>, vector<128x16xf32>
    %cst_24 = arith.constant dense<0.000000e+00> : vector<8x16xf32>
    %29 = tpu.matmul %27, %28, %cst_24 {dimension_numbers = #tpu.dot_dimension_numbers<[1], [0], [0], [1], [0, 0, 1, 1], [], []>} : vector<8x128xf32>, vector<128x16xf32>, vector<8x16xf32> -> vector<8x16xf32>
    %c0_25 = arith.constant 0 : index
    %c0_26 = arith.constant 0 : index
    %30 = vector.load %arg11[%c0_25, %c0_26] : memref<1x16xf32, #tpu.memory_space<vmem>>, vector<1x16xf32>
    %31 = vector.broadcast %30 : vector<1x16xf32> to vector<8x16xf32>
    %32 = arith.addf %29, %31 : vector<8x16xf32>
    %c0_27 = arith.constant 0 : index
    %c0_28 = arith.constant 0 : index
    %33 = vector.load %arg12[%c0_27, %c0_28] : memref<8x16xf32, #tpu.memory_space<vmem>>, vector<8x16xf32>
    tpu.vector_store %arg12[%c0_27, %c0_28], %32 {strides = array<i32>} : memref<8x16xf32, #tpu.memory_space<vmem>>, vector<8x16xf32>,
    return
  }
  func.func @transform_0(%arg0: i32) -> (i32, i32) {
    %c0_i32 = arith.constant 0 : i32
    %c0_i32_0 = arith.constant 0 : i32
    return %arg0, %c0_i32 : i32, i32
  }
  func.func @transform_1(%arg0: i32) -> (i32, i32) {
    %c0_i32 = arith.constant 0 : i32
    %c0_i32_0 = arith.constant 0 : i32
    return %arg0, %c0_i32 : i32, i32
  }
  func.func @transform_2(%arg0: i32) -> (i32, i32) {
    %c0_i32 = arith.constant 0 : i32
    %c0_i32_0 = arith.constant 0 : i32
    %c0_i32_1 = arith.constant 0 : i32
    return %c0_i32, %c0_i32_0 : i32, i32
  }
  func.func @transform_3(%arg0: i32) -> (i32, i32) {
    %c0_i32 = arith.constant 0 : i32
    %c0_i32_0 = arith.constant 0 : i32
    %c0_i32_1 = arith.constant 0 : i32
    return %c0_i32, %c0_i32_0 : i32, i32
  }
  func.func @transform_4(%arg0: i32) -> (i32, i32) {
    %c0_i32 = arith.constant 0 : i32
    %c0_i32_0 = arith.constant 0 : i32
    %c0_i32_1 = arith.constant 0 : i32
    return %c0_i32, %c0_i32_0 : i32, i32
  }
  func.func @transform_5(%arg0: i32) -> (i32, i32) {
    %c0_i32 = arith.constant 0 : i32
    %c0_i32_0 = arith.constant 0 : i32
    %c0_i32_1 = arith.constant 0 : i32
    return %c0_i32, %c0_i32_0 : i32, i32
  }
  func.func @transform_6(%arg0: i32) -> (i32, i32) {
    %c0_i32 = arith.constant 0 : i32
    %c0_i32_0 = arith.constant 0 : i32
    %c0_i32_1 = arith.constant 0 : i32
    return %c0_i32, %c0_i32_0 : i32, i32
  }
  func.func @transform_7(%arg0: i32) -> (i32, i32) {
    %c0_i32 = arith.constant 0 : i32
    %c0_i32_0 = arith.constant 0 : i32
    %c0_i32_1 = arith.constant 0 : i32
    return %c0_i32, %c0_i32_0 : i32, i32
  }
  func.func @transform_8(%arg0: i32) -> (i32, i32) {
    %c0_i32 = arith.constant 0 : i32
    %c0_i32_0 = arith.constant 0 : i32
    %c0_i32_1 = arith.constant 0 : i32
    return %c0_i32, %c0_i32_0 : i32, i32
  }
  func.func @transform_9(%arg0: i32) -> (i32, i32) {
    %c0_i32 = arith.constant 0 : i32
    %c0_i32_0 = arith.constant 0 : i32
    %c0_i32_1 = arith.constant 0 : i32
    return %c0_i32, %c0_i32_0 : i32, i32
  }
  func.func @transform_10(%arg0: i32) -> (i32, i32) {
    %c0_i32 = arith.constant 0 : i32
    %c0_i32_0 = arith.constant 0 : i32
    %c0_i32_1 = arith.constant 0 : i32
    return %c0_i32, %c0_i32_0 : i32, i32
  }
  func.func @transform_11(%arg0: i32) -> (i32, i32) {
    %c0_i32 = arith.constant 0 : i32
    %c0_i32_0 = arith.constant 0 : i32
    return %arg0, %c0_i32 : i32, i32
  }
}

</mosaic_0001>

<bundles_post_ra>
// kernel: fc_network_forward.1
= control target key start
LH: loop header
LB: loop body
LE: loop exit
PB: predicated region body
PF: predicated region fallthrough
CT: control target
= control target key end

     0   :  { %16 = vsyncpa [#allocation3], 0  ;;  %s1004_s0 = inlined_call_operand.vmem [shape: f32[8,16], index: 0, kind: input, shape index: {}]   ;;  %s1005_s1 = inlined_call_operand.vmem [shape: f32[8,1], index: 1, kind: input, shape index: {}]   ;;  %s1006_s2 = inlined_call_operand.vmem [shape: f32[16,128], index: 2, kind: input, shape index: {}]   ;;  %s1007_s3 = inlined_call_operand.vmem [shape: f32[1,128], index: 3, kind: input, shape index: {}]   ;;  %s1008_s4 = inlined_call_operand.vmem [shape: f32[1,128], index: 4, kind: input, shape index: {}]   ;;  %s1009_s5 = inlined_call_operand.vmem [shape: f32[128,128], index: 5, kind: input, shape index: {}]   ;;  %s1010_s6 = inlined_call_operand.vmem [shape: f32[1,128], index: 6, kind: input, shape index: {}]   ;;  %s1011_s7 = inlined_call_operand.hbm [shape: f32[128,128], index: 7, kind: input, shape index: {}]   ;;  %s1012_s8 = inlined_call_operand.vmem [shape: f32[1,128], index: 8, kind: input, shape index: {}]   ;;  %s1013_s9 = inlined_call_operand.vmem [shape: f32[128,16], index: 9, kind: input, shape index: {}]   ;;  %s1014_s10 = inlined_call_operand.vmem [shape: f32[1,16], index: 10, kind: input, shape index: {}]   ;;  %s1015_s11 = inlined_call_operand.hbm [shape: f32[8,16], index: 11, kind: output, shape index: {}]  }
   0x1   :  { %17 = vsyncpa [#allocation4], 0  ;;  %s754_s17 = smov [#allocation2]   ;;  %s706_s21 = scalar_lea.hbm %s1011_s7, 2048 }
   0x2   :  { %s37_s18 = sshll.u32 %s754_s17, 4  ;;  %p707_p0 = scmp.ne.s32.totalorder %s1011_s7, %s706_s21  ;;  %s38_s18 = int_to_ptr.vmem [resolvable:$true] %s37_s18 }
   0x3   :  { %p710_p1 = scmp.lt.u32.totalorder %s706_s21, %s1011_s7 }
   0x5   :  { %p712_p2 = pnand %p710_p1, %p707_p0 }
   0x7   :  { %715 = shalt.err (!%p712_p2)
}
   0x8   :  { %s716_s26 = scalar_lea.vmem %s38_s18, 2048  ;;  %p721_p4 = scmp.lt.s32.totalorder %s38_s18, %s38_s18 }
   0x9   :  { %p717_p3 = scmp.ne.s32.totalorder %s38_s18, %s716_s26  ;;  %p722_p5 = scmp.lt.s32.totalorder %s716_s26, %s716_s26 }
   0xb   :  { %p723_p6 = por %p722_p5, %p721_p4 }
   0xd   :  { %p724_p7 = pnand %p723_p6, %p717_p3 }
   0xf   :  { %727 = shalt.err (!%p724_p7)
}
  0x10   :  { %s755_s27 = smov 128   ;;  %s756_s28 = smov 8  }
  0x11   :  { %43 = dma.hbm_to_vmem [thread:$0]  %s1011_s7, 2048, %s38_s18, [#allocation3], %s755_s27, %s755_s27, %s756_s28  }
  0x12   :  { %750 = dma.done.wait [#allocation3], 2048  }
  0x13   :  { %751 = vsyncadd [#allocation3], 4294965248  ;;  %v757_v0 = vmov 0.0|0.0   ;;  %vm758_vm0 = vmmov 0   ;;  %v759_v1 = vmov 0.0   ;;  %v760_v2 = vmov 0  }
  0x14   :  { %622 = vmatprep.subr.bf16.mxu0 %v757_v0  ;;  %514 = vmatprep.mubr.msk.f32.mxu0 %vm758_vm0, %v759_v1  ;;  %v55_v3 = vld [vmem:[%s1006_s2] sm:$0xff]  ;;  %v56_v4 = vld [vmem:[%s1006_s2 + $0x8] sm:$0xff]  ;;  %v155_v10 = vld [vmem:[%s1009_s5 + $0x10] sm:$0xff]  ;;  %vm70_vm1 = vcmask 130048   ;;  %s761_s17 = smov [#allocation5]  }
  0x15   :  { %705 = vset.pattern.permute.xlu0 %v760_v2  ;;  %625 = vmatprep.subr.bf16.mxu1 %v757_v0  ;;  %v623_v5 = vpack.c.bf16 %v56_v4, %v55_v3  ;;  %v54_v6 = vld [vmem:[%s1005_s1] sm:$0xff]  ;;  %v154_v8 = vld [vmem:[%s1009_s5 + $0x8] sm:$0xff]  ;;  %v156_v11 = vld [vmem:[%s1009_s5 + $0x18] sm:$0xff]  ;;  %s441_s18 = sshll.u32 %s761_s17, 4  ;;  %s442_s18 = int_to_ptr.vmem [resolvable:$true] %s441_s18 }
  0x16   :  { %549 = vmatprep.mubr.msk.f32.mxu1 %vm758_vm0, %v759_v1  ;;  %v153_v7 = vld [vmem:[%s1009_s5] sm:$0xff]  ;;  %60 = vperm.xlu0 %705, %v54_v6   ;;  %v629_v13 = vpack.c.bf16 %v156_v11, %v155_v10  ;;  %v158_v15 = vld [vmem:[%s1009_s5 + $0x28] sm:$0xff]  ;;  %v159_v17 = vld [vmem:[%s1009_s5 + $0x30] sm:$0xff]  ;;  %p733_p9 = scmp.lt.s32.totalorder %s442_s18, %s442_s18 }
  0x17   :  { %v626_v9 = vpack.c.bf16 %v154_v8, %v153_v7  ;;  %624 = vmatpush3.bf16.msra.mxu0 %v623_v5  ;;  %v53_v12 = vld [vmem:[%s1004_s0] sm:$0xff]  ;;  %v160_v18 = vld [vmem:[%s1009_s5 + $0x38] sm:$0xff]  ;;  %v162_v21 = vld [vmem:[%s1009_s5 + $0x48] sm:$0xff] }
  0x18   :  { %649 = vmatprep.subr.bf16.mxu0 %v757_v0  ;;  %v157_v14 = vld [vmem:[%s1009_s5 + $0x20] sm:$0xff]  ;;  %v635_v19 = vpack.c.bf16 %v160_v18, %v159_v17  ;;  %v163_v23 = vld [vmem:[%s1009_s5 + $0x50] sm:$0xff]  ;;  %v164_v24 = vld [vmem:[%s1009_s5 + $0x58] sm:$0xff] }
  0x19   :  { %627 = vmatpush3.bf16.msra.mxu1 %v626_v9  ;;  %v632_v16 = vpack.c.bf16 %v158_v15, %v157_v14  ;;  %v161_v20 = vld [vmem:[%s1009_s5 + $0x40] sm:$0xff]  ;;  %v641_v25 = vpack.c.bf16 %v164_v24, %v163_v23  ;;  %v166_v27 = vld [vmem:[%s1009_s5 + $0x68] sm:$0xff]  ;;  %v167_v29 = vld [vmem:[%s1009_s5 + $0x70] sm:$0xff] }
  0x1a   :  { %628 = vmatprep.subr.bf16.mxu1 %v757_v0  ;;  %515 = vmatmul.mubr.msk.f32.vlgmr.msra.gmra.mrb[0].mxu0 %vm70_vm1, %v53_v12  ;;  %v638_v22 = vpack.c.bf16 %v162_v21, %v161_v20  ;;  %v165_v26 = vld [vmem:[%s1009_s5 + $0x60] sm:$0xff]  ;;  %v168_v30 = vld [vmem:[%s1009_s5 + $0x78] sm:$0xff]  ;;  %v248_v33 = vld [vmem:[#allocation2 + $0x8] sm:$0xff] }
  0x1b   :  { %584 = vmatprep.mubr.msk.f32.mxu0 %vm758_vm0, %v759_v1  ;;  %v644_v28 = vpack.c.bf16 %v166_v27, %v165_v26  ;;  %v647_v31 = vpack.c.bf16 %v168_v30, %v167_v29  ;;  %v247_v32 = vld [vmem:[#allocation2] sm:$0xff]  ;;  %v249_v34 = vld [vmem:[#allocation2 + $0x10] sm:$0xff]  ;;  %v250_v36 = vld [vmem:[#allocation2 + $0x18] sm:$0xff] }
  0x1c   :  { %v650_v35 = vpack.c.bf16 %v248_v33, %v247_v32  ;;  %v653_v37 = vpack.c.bf16 %v250_v36, %v249_v34  ;;  %v251_v38 = vld [vmem:[#allocation2 + $0x20] sm:$0xff]  ;;  %v252_v39 = vld [vmem:[#allocation2 + $0x28] sm:$0xff]  ;;  %v253_v41 = vld [vmem:[#allocation2 + $0x30] sm:$0xff] }
  0x1d   :  { %630 = vmatpush3.bf16.msra.mxu1 %v629_v13  ;;  %v656_v40 = vpack.c.bf16 %v252_v39, %v251_v38  ;;  %v254_v42 = vld [vmem:[#allocation2 + $0x38] sm:$0xff]  ;;  %v255_v44 = vld [vmem:[#allocation2 + $0x40] sm:$0xff]  ;;  %v256_v45 = vld [vmem:[#allocation2 + $0x48] sm:$0xff] }
  0x1e   :  { %631 = vmatprep.subr.bf16.mxu1 %v757_v0  ;;  %651 = vmatpush3.bf16.msra.mxu0 %v650_v35  ;;  %v659_v43 = vpack.c.bf16 %v254_v42, %v253_v41  ;;  %v662_v46 = vpack.c.bf16 %v256_v45, %v255_v44  ;;  %v257_v47 = vld [vmem:[#allocation2 + $0x50] sm:$0xff]  ;;  %v258_v48 = vld [vmem:[#allocation2 + $0x58] sm:$0xff]  ;;  %v259_v50 = vld [vmem:[#allocation2 + $0x60] sm:$0xff] }
  0x1f   :  { %652 = vmatprep.subr.bf16.mxu0 %v757_v0  ;;  %v665_v49 = vpack.c.bf16 %v258_v48, %v257_v47  ;;  %v260_v51 = vld [vmem:[#allocation2 + $0x68] sm:$0xff]  ;;  %v450_v53 = vld [vmem:[%s1007_s3] ss:$0 sm:$0xff]  ;;  %v261_v62 = vld [vmem:[#allocation2 + $0x70] sm:$0xff] }
  0x20   :  { %v668_v52 = vpack.c.bf16 %v260_v51, %v259_v50  ;;  %v452_v57 = vld [vmem:[%s1008_s4] ss:$0 sm:$0xff]  ;;  %v262_v63 = vld [vmem:[#allocation2 + $0x78] sm:$0xff]  ;;  %v342_v4 = vld [vmem:[%s1013_s9 + $0x8] sm:$0xff] }
  0x21   :  { %633 = vmatpush3.bf16.msra.mxu1 %v632_v16  ;;  %v671_v2 = vpack.c.bf16 %v262_v63, %v261_v62  ;;  %v341_v3 = vld [vmem:[%s1013_s9] sm:$0xff]  ;;  %v343_v5 = vld [vmem:[%s1013_s9 + $0x10] sm:$0xff]  ;;  %v346_v9 = vld [vmem:[%s1013_s9 + $0x28] sm:$0xff] }
  0x22   :  { %634 = vmatprep.subr.bf16.mxu1 %v757_v0  ;;  %654 = vmatpush3.bf16.msra.mxu0 %v653_v37  ;;  %v674_v6 = vpack.c.bf16 %v342_v4, %v341_v3  ;;  %v345_v8 = vld [vmem:[%s1013_s9 + $0x20] sm:$0xff]  ;;  %v347_v11 = vld [vmem:[%s1013_s9 + $0x30] sm:$0xff]  ;;  %v348_v12 = vld [vmem:[%s1013_s9 + $0x38] sm:$0xff] }
  0x23   :  { %655 = vmatprep.subr.bf16.mxu0 %v757_v0  ;;  %v680_v10 = vpack.c.bf16 %v346_v9, %v345_v8  ;;  %v683_v13 = vpack.c.bf16 %v348_v12, %v347_v11  ;;  %v349_v14 = vld [vmem:[%s1013_s9 + $0x40] sm:$0xff]  ;;  %v350_v15 = vld [vmem:[%s1013_s9 + $0x48] sm:$0xff]  ;;  %v351_v17 = vld [vmem:[%s1013_s9 + $0x50] sm:$0xff] }
  0x24   :  { %v686_v16 = vpack.c.bf16 %v350_v15, %v349_v14  ;;  %v352_v18 = vld [vmem:[%s1013_s9 + $0x58] sm:$0xff]  ;;  %v353_v20 = vld [vmem:[%s1013_s9 + $0x60] sm:$0xff]  ;;  %v354_v21 = vld [vmem:[%s1013_s9 + $0x68] sm:$0xff] }
  0x25   :  { %636 = vmatpush3.bf16.msra.mxu1 %v635_v19  ;;  %v689_v19 = vpack.c.bf16 %v352_v18, %v351_v17  ;;  %v453_v23 = vld [vmem:[%s1010_s6] ss:$0 sm:$0xff]  ;;  %v356_v29 = vld [vmem:[%s1013_s9 + $0x78] sm:$0xff] }
  0x26   :  { %637 = vmatprep.subr.bf16.mxu1 %v757_v0  ;;  %657 = vmatpush3.bf16.msra.mxu0 %v656_v40  ;;  %v455_v35 = vld [vmem:[%s1014_s10] ss:$0 sm:$0xff] }
  0x27   :  { %658 = vmatprep.subr.bf16.mxu0 %v757_v0 }
  0x29   :  { %639 = vmatpush3.bf16.msra.mxu1 %v638_v22  ;;  %v692_v22 = vpack.c.bf16 %v354_v21, %v353_v20 }
  0x2a   :  { %640 = vmatprep.subr.bf16.mxu1 %v757_v0  ;;  %660 = vmatpush3.bf16.msra.mxu0 %v659_v43 }
  0x2b   :  { %661 = vmatprep.subr.bf16.mxu0 %v757_v0 }
  0x2d   :  { %642 = vmatpush3.bf16.msra.mxu1 %v641_v25 }
  0x2e   :  { %643 = vmatprep.subr.bf16.mxu1 %v757_v0  ;;  %663 = vmatpush3.bf16.msra.mxu0 %v662_v46 }
  0x2f   :  { %664 = vmatprep.subr.bf16.mxu0 %v757_v0 }
  0x31   :  { %645 = vmatpush3.bf16.msra.mxu1 %v644_v28  ;;  %v355_v28 = vld [vmem:[%s1013_s9 + $0x70] sm:$0xff] }
  0x32   :  { %646 = vmatprep.subr.bf16.mxu1 %v757_v0  ;;  %666 = vmatpush3.bf16.msra.mxu0 %v665_v49  ;;  %v695_v30 = vpack.c.bf16 %v356_v29, %v355_v28 }
  0x33   :  { %667 = vmatprep.subr.bf16.mxu0 %v757_v0 }
  0x35   :  { %648 = vmatpush3.bf16.msra.mxu1 %v647_v31 }
  0x36   :  { %673 = vmatprep.subr.bf16.mxu1 %v757_v0  ;;  %669 = vmatpush3.bf16.msra.mxu0 %v668_v52 }
  0x37   :  { %670 = vmatprep.subr.bf16.mxu0 %v757_v0 }
  0x3a   :  { %672 = vmatpush3.bf16.msra.mxu0 %v671_v2 }
  0x95   :  { %v61_v54 = vpop.permute.xlu0 %60 }
  0x96   :  { %v69_v55 = vmul.f32 %v450_v53, %v61_v54 }
  0xed   :  { %v140_v56 = vpop.f32.mrb[0].mxu0 }
  0xee   :  { %v141_v58 = vadd.f32 %v140_v56, %v69_v55  ;;  %v516_v59 = vpop.f32.mrb[1].mxu0 }
  0xf0   :  { %v151_v60 = vadd.f32 %v452_v57, %v141_v58 }
  0xf2   :  { %v152_v61 = vmax.f32 %v151_v60, 0.0 }
  0xf4   :  { %550 = vmatmul.mubr.f32.vlgmr.msra.gmra.mrb[0].mxu1 %v152_v61 }
  0xf5   :  { %619 = vmatprep.mubr.msk.f32.mxu1 %vm758_vm0, %v759_v1  ;;  %v344_v1 = vld [vmem:[%s1013_s9 + $0x18] sm:$0xff]  ;;  %675 = vmatpush3.bf16.msra.mxu1 %v674_v6  ;;  %s728_s9 = scalar_lea.vmem %s442_s18, 128 }
  0xf6   :  { %v677_v7 = vpack.c.bf16 %v344_v1, %v343_v5  ;;  %676 = vmatprep.subr.bf16.mxu1 %v757_v0  ;;  %p729_p8 = scmp.ne.s32.totalorder %s442_s18, %s728_s9  ;;  %p734_p10 = scmp.lt.s32.totalorder %s728_s9, %s728_s9 }
  0xf8   :  { %p735_p11 = por %p734_p10, %p733_p9 }
  0xf9   :  { %678 = vmatpush3.bf16.msra.mxu1 %v677_v7 }
  0xfa   :  { %679 = vmatprep.subr.bf16.mxu1 %v757_v0  ;;  %p736_p12 = pnand %p735_p11, %p729_p8 }
  0xfd   :  { %681 = vmatpush3.bf16.msra.mxu1 %v680_v10 }
  0xfe   :  { %682 = vmatprep.subr.bf16.mxu1 %v757_v0 }
 0x101   :  { %684 = vmatpush3.bf16.msra.mxu1 %v683_v13 }
 0x102   :  { %685 = vmatprep.subr.bf16.mxu1 %v757_v0 }
 0x105   :  { %687 = vmatpush3.bf16.msra.mxu1 %v686_v16 }
 0x106   :  { %688 = vmatprep.subr.bf16.mxu1 %v757_v0 }
 0x109   :  { %690 = vmatpush3.bf16.msra.mxu1 %v689_v19 }
 0x10a   :  { %691 = vmatprep.subr.bf16.mxu1 %v757_v0 }
 0x10d   :  { %693 = vmatpush3.bf16.msra.mxu1 %v692_v22 }
 0x10e   :  { %694 = vmatprep.subr.bf16.mxu1 %v757_v0  ;;  %v454_v0 = vld [vmem:[%s1012_s8] ss:$0 sm:$0xff] }
 0x111   :  { %696 = vmatpush3.bf16.msra.mxu1 %v695_v30 }
 0x1c7   :  { %v242_v24 = vpop.f32.mrb[0].mxu1 }
 0x1c8   :  { %v243_v25 = vadd.f32 %v453_v23, %v242_v24  ;;  %v551_v26 = vpop.f32.mrb[1].mxu1 }
 0x1ca   :  { %v246_v27 = vmax.f32 %v243_v25, 0.0 }
 0x1cc   :  { %585 = vmatmul.mubr.f32.vlgmr.msra.gmra.mrb[2].mxu0 %v246_v27 }
 0x29f   :  { %v336_v31 = vpop.f32.mrb[2].mxu0 }
 0x2a0   :  { %v337_v32 = vadd.f32 %v454_v0, %v336_v31  ;;  %v586_v33 = vpop.f32.mrb[3].mxu0 }
 0x2a2   :  { %v340_v34 = vmax.f32 %v337_v32, 0.0 }
 0x2a4   :  { %620 = vmatmul.mubr.f32.vlgmr.msra.gmra.mrb[2].mxu1 %v340_v34 }
 0x377   :  { %v430_v36 = vpop.f32.mrb[2].mxu1 }
 0x378   :  { %v431_v37 = vadd.f32 %v455_v35, %v430_v36  ;;  %v621_v38 = vpop.f32.mrb[3].mxu1 }
 0x37a   :  { %434 = vst.msk [vmem:[#allocation5] sm:$0xff] %vm70_vm1, %v431_v37 }
 0x37b   :  { %739 = shalt.err (!%p736_p12)
}
 0x37c   :  { %s740_s20 = scalar_lea.hbm %s1015_s11, 128 }
 0x37d   :  { %p741_p13 = scmp.ne.s32.totalorder %s1015_s11, %s740_s20  ;;  %p744_p0 = scmp.lt.u32.totalorder %s740_s20, %s1015_s11 }
 0x37f   :  { %p746_p1 = pnand %p744_p0, %p741_p13 }
 0x381   :  { %749 = shalt.err (!%p746_p1)
}
 0x382   :  { %444 = dma.vmem_to_hbm [thread:$0]  %s442_s18, 128, %s1015_s11, [#allocation4]  }
 0x383   :  { %752 = dma.done.wait [#allocation4], 128  }
 0x384   :  { %753 = vsyncadd [#allocation4], 4294967168 }
 0x385   :  { %448 = vsyncpa [#allocation3], 1 }
 0x386   :  { %449 = vsyncpa [#allocation4], 1 }

</bundles_post_ra>
